<compile_context>
chip_gen: v7x
topology: tpu7x:2x2x1
jax: 0.10.0
libtpu: 0.0.40
codegen_flags: <defaults>
</compile_context>

<pallas_src>
import math
from functools import partial

import jax
import jax.numpy as jnp
from jax.experimental import pallas as pl
from jax.experimental.pallas import tpu as pltpu


# ----------------------------------------------------------------------------
# Fused kernel: QKV projection + per-head attention + output projection,
# one (batch, q-tile) block per grid step. K/V projection cached per batch.
# ----------------------------------------------------------------------------
def _mha_fused_kernel(q_ref, k_ref, v_ref,
                      wq_ref, bq_ref, wk_ref, bk_ref, wv_ref, bv_ref,
                      wo_ref, bo_ref, o_ref,
                      kproj_ref, vproj_ref, ctx_ref, *, heads, d_k):
    # Block shapes:
    #   q_ref           : (1, tq, D)   bfloat16
    #   k_ref, v_ref    : (1, S,  D)   bfloat16 (block index constant over q-tiles)
    #   w*_ref          : (D, D)       bfloat16 (scale pre-folded into wq)
    #   b*_ref          : (1, D)       float32
    #   o_ref           : (1, tq, D)   float32
    #   kproj_ref/vproj : (S, D)       bfloat16 VMEM scratch (per-batch cache)
    #   ctx_ref         : (tq, D)      bfloat16 VMEM scratch (head concat)

    # Project K/V for this batch ONCE (only on the first q-tile of the batch).
    @pl.when(pl.program_id(1) == 0)
    def _():
        k = jnp.dot(k_ref[0], wk_ref[...],
                    preferred_element_type=jnp.float32) + bk_ref[...]
        v = jnp.dot(v_ref[0], wv_ref[...],
                    preferred_element_type=jnp.float32) + bv_ref[...]
        kproj_ref[...] = k.astype(jnp.bfloat16)
        vproj_ref[...] = v.astype(jnp.bfloat16)

    # Q projection for this query tile (1/sqrt(d_k) already folded into Wq/bq).
    q = jnp.dot(q_ref[0], wq_ref[...],
                preferred_element_type=jnp.float32) + bq_ref[...]      # (tq, D)
    q_bf = q.astype(jnp.bfloat16)
    k_bf = kproj_ref[...]
    v_bf = vproj_ref[...]

    # Static loop over heads; each head is a lane-column slice of the
    # projected tiles. (Alternative for large D with d_k % 128 != 0:
    # pre-slice per-head weight columns at pack time instead.)
    for h in range(heads):
        lo = h * d_k
        q_h = q_bf[:, lo:lo + d_k]                # (tq, d_k)
        k_h = k_bf[:, lo:lo + d_k]                # (S,  d_k)
        v_h = v_bf[:, lo:lo + d_k]                # (S,  d_k)

        # scores[i, j] = <q_i, k_j> ; contract last dims, no explicit k.T.
        scores = jax.lax.dot_general(
            q_h, k_h,
            dimension_numbers=(((1,), (1,)), ((), ())),
            preferred_element_type=jnp.float32)                       # (tq, S)

        # Softmax over the key axis (== PyTorch Softmax(dim=1) on [i,j,b,h]).
        m = jnp.max(scores, axis=-1, keepdims=True)
        e = jnp.exp((scores - m).astype(jnp.bfloat16))                # bf16 EUP
        denom = jnp.sum(e.astype(jnp.float32), axis=-1, keepdims=True)
        attn = (e * pl.reciprocal(denom, approx=True)).astype(jnp.bfloat16)

        ctx = jnp.dot(attn, v_h, preferred_element_type=jnp.float32)  # (tq, d_k)
        ctx_ref[:, lo:lo + d_k] = ctx.astype(jnp.bfloat16)

    # Fused output projection.
    o_ref[0] = (jnp.dot(ctx_ref[...], wo_ref[...],
                        preferred_element_type=jnp.float32)
                + bo_ref[...]).astype(o_ref.dtype)


# ----------------------------------------------------------------------------
# VMEM-budget-aware tiling helpers
# ----------------------------------------------------------------------------
def _vmem_footprint_bytes(tq, S, D):
    bf16, f32 = 2, 4
    blocks = (2 * tq * D * bf16          # Q block (double-buffered)
              + 2 * 2 * S * D * bf16     # K + V blocks (double-buffered)
              + 2 * 4 * D * D * bf16     # 4 weight matrices (double-buffered)
              + 2 * 4 * D * f32          # 4 bias rows (double-buffered)
              + 2 * tq * D * f32)        # output block (double-buffered)
    scratch = 2 * S * D * bf16 + tq * D * bf16       # K/V proj cache + ctx
    temps = 2 * tq * D * f32 + 2 * tq * S * f32      # projected q, scores/exp
    return blocks + scratch + temps


def _vmem_budget_bytes():
    try:
        cap = pltpu.get_tpu_info().vmem_capacity_bytes
    except Exception:
        cap = 64 << 20   # conservative (v7x-sized) fallback
    return int(0.7 * cap)


def _pick_q_tile(S, D, budget):
    """Largest query tile whose estimated footprint fits the VMEM budget."""
    for t in (1024, 512, 256, 128, 64, 32, 16, 8):
        if S % t == 0 and _vmem_footprint_bytes(t, S, D) <= budget:
            return t
    # TODO(synk): flash-style key-axis tiling for very long / odd-length seqs.
    return S


# ----------------------------------------------------------------------------
# One-time parameter preprocessing (hoisted out of the forward path)
# ----------------------------------------------------------------------------
def pack_params(params, *, heads):
    d_model = params["wq"].shape[0]
    d_k = d_model // heads
    scale = 1.0 / math.sqrt(d_k)
    return {
        # 1/sqrt(d_k) folded into the query projection (weights AND bias).
        "wq": (params["wq"] * scale).astype(jnp.bfloat16),
        "bq": (params["bq"] * scale).reshape(1, -1).astype(jnp.float32),
        "wk": params["wk"].astype(jnp.bfloat16),
        "bk": params["bk"].reshape(1, -1).astype(jnp.float32),
        "wv": params["wv"].astype(jnp.bfloat16),
        "bv": params["bv"].reshape(1, -1).astype(jnp.float32),
        "wo": params["wo"].astype(jnp.bfloat16),
        "bo": params["bo"].reshape(1, -1).astype(jnp.float32),
    }


def multi_head_attention(query, key, value, packed, *, heads):
    """query/key/value: (seq_len, batch, d_model) float32 (PyTorch layout)."""
    S, B, D = query.shape
    assert D % heads == 0
    d_k = D // heads

    budget = _vmem_budget_bytes()
    tq = _pick_q_tile(S, D, budget)
    n_q = S // tq

    # Wrapper glue: batch to the leading dim + bf16 cast fused in one XLA op,
    # so the kernel DMAs lane-dense bf16 (tq, D) / (S, D) tiles.
    q_bsd = jnp.transpose(query, (1, 0, 2)).astype(jnp.bfloat16)
    k_bsd = jnp.transpose(key, (1, 0, 2)).astype(jnp.bfloat16)
    v_bsd = jnp.transpose(value, (1, 0, 2)).astype(jnp.bfloat16)

    q_spec = pl.BlockSpec((1, tq, D), lambda b, i: (b, i, 0))
    kv_spec = pl.BlockSpec((1, S, D), lambda b, i: (b, 0, 0))
    w_spec = pl.BlockSpec((D, D), lambda b, i: (0, 0))
    b_spec = pl.BlockSpec((1, D), lambda b, i: (0, 0))

    vmem_limit = int(min(max(2 * _vmem_footprint_bytes(tq, S, D) + (4 << 20),
                             16 << 20),
                         max(budget, 32 << 20)))

    out_bsd = pl.pallas_call(
        partial(_mha_fused_kernel, heads=heads, d_k=d_k),
        out_shape=jax.ShapeDtypeStruct((B, S, D), jnp.float32),
        grid=(B, n_q),
        in_specs=[q_spec, kv_spec, kv_spec,
                  w_spec, b_spec,      # Wq, bq (scale pre-folded)
                  w_spec, b_spec,      # Wk, bk
                  w_spec, b_spec,      # Wv, bv
                  w_spec, b_spec],     # Wo, bo
        out_specs=pl.BlockSpec((1, tq, D), lambda b, i: (b, i, 0)),
        scratch_shapes=[pltpu.VMEM((S, D), jnp.bfloat16),    # K projected
                        pltpu.VMEM((S, D), jnp.bfloat16),    # V projected
                        pltpu.VMEM((tq, D), jnp.bfloat16)],  # head-concat ctx
        compiler_params=pltpu.CompilerParams(
            # batch stays "parallel" (v7x megacore shards on it); the q-tile
            # axis carries the per-batch K/V projection cache -> "arbitrary".
            dimension_semantics=("parallel", "arbitrary"),
            vmem_limit_bytes=vmem_limit),
    )(q_bsd, k_bsd, v_bsd,
      packed["wq"], packed["bq"],
      packed["wk"], packed["bk"],
      packed["wv"], packed["bv"],
      packed["wo"], packed["bo"])

    # Back to PyTorch layout (S, B, D).
    return jnp.transpose(out_bsd, (1, 0, 2))


# ----------------------------------------------------------------------------
# Pure-JAX reference (f32) for correctness checking only
# ----------------------------------------------------------------------------
def _reference(query, key, value, params, *, heads):
    S, B, D = query.shape
    d_k = D // heads
    scale = 1.0 / math.sqrt(d_k)

    def proj(x, w, b):
        y = jnp.einsum("sbd,de->sbe", x, w) + b
        return y.reshape(S, B, heads, d_k)

    q = proj(query, params["wq"], params["bq"])
    k = proj(key, params["wk"], params["bk"])
    v = proj(value, params["wv"], params["bv"])
    scores = jnp.einsum("ibhd,jbhd->ijbh", q, k) * scale
    attn = jax.nn.softmax(scores, axis=1)
    x = jnp.einsum("ijbh,jbhd->ibhd", attn, v).reshape(S, B, D)
    return jnp.einsum("sbd,de->sbe", x, params["wo"]) + params["bo"]


if __name__ == "__main__":
    heads = 4
    d_model = 32
    seq_len = 8
    batch = 2

    key0 = jax.random.PRNGKey(0)
    ks = jax.random.split(key0, 11)

    # Deterministic synthetic parameters.
    # Weights stored as (in_features, out_features) == transpose of nn.Linear.weight.
    params = {
        "wq": 0.1 * jax.random.normal(ks[0], (d_model, d_model), jnp.float32),
        "bq": 0.1 * jax.random.normal(ks[1], (d_model,), jnp.float32),
        "wk": 0.1 * jax.random.normal(ks[2], (d_model, d_model), jnp.float32),
        "bk": 0.1 * jax.random.normal(ks[3], (d_model,), jnp.float32),
        "wv": 0.1 * jax.random.normal(ks[4], (d_model, d_model), jnp.float32),
        "bv": 0.1 * jax.random.normal(ks[5], (d_model,), jnp.float32),
        "wo": 0.1 * jax.random.normal(ks[6], (d_model, d_model), jnp.float32),
        "bo": 0.1 * jax.random.normal(ks[7], (d_model,), jnp.float32),
    }
    packed = pack_params(params, heads=heads)   # one-time preprocessing

    # Inputs in PyTorch layout: (seq_len, batch, d_model)
    query = jax.random.normal(ks[8], (seq_len, batch, d_model), jnp.float32)
    key_t = jax.random.normal(ks[9], (seq_len, batch, d_model), jnp.float32)
    value = jax.random.normal(ks[10], (seq_len, batch, d_model), jnp.float32)

    out = multi_head_attention(query, key_t, value, packed, heads=heads)
    out = jax.block_until_ready(out)

    ref = _reference(query, key_t, value, params, heads=heads)
    assert out.shape == (seq_len, batch, d_model)
    err = float(jnp.max(jnp.abs(out - ref)))
    # bf16 MXU inputs + bf16 exp (f32 accumulate) + approx reciprocal ->
    # looser tolerance than a pure-f32 path.
    assert err < 3e-2, f"mismatch vs reference, max abs err = {err}"

    print("KERNEL_OK")
</pallas_src>

<mosaic_0001>
module attributes {stable_mosaic.version = 11 : i64} {
  func.func @_mha_fused_kernel(%arg0: i32, %arg1: i32, %arg2: memref<1x8x32xbf16, #tpu.memory_space<vmem>>, %arg3: memref<1x8x32xbf16, #tpu.memory_space<vmem>>, %arg4: memref<1x8x32xbf16, #tpu.memory_space<vmem>>, %arg5: memref<32x32xbf16, #tpu.memory_space<vmem>>, %arg6: memref<1x32xf32, #tpu.memory_space<vmem>>, %arg7: memref<32x32xbf16, #tpu.memory_space<vmem>>, %arg8: memref<1x32xf32, #tpu.memory_space<vmem>>, %arg9: memref<32x32xbf16, #tpu.memory_space<vmem>>, %arg10: memref<1x32xf32, #tpu.memory_space<vmem>>, %arg11: memref<32x32xbf16, #tpu.memory_space<vmem>>, %arg12: memref<1x32xf32, #tpu.memory_space<vmem>>, %arg13: memref<1x8x32xf32, #tpu.memory_space<vmem>>, %arg14: memref<8x32xbf16, #tpu.memory_space<vmem>>, %arg15: memref<8x32xbf16, #tpu.memory_space<vmem>>, %arg16: memref<8x32xbf16, #tpu.memory_space<vmem>>) attributes {dimension_semantics = [#tpu.dimension_semantics<parallel>, #tpu.dimension_semantics<arbitrary>], iteration_bounds = array<i64: 2, 1>, scalar_prefetch = 0 : i64, scratch_operands = 3 : i64, tpu.core_type = #tpu.core_type<tc>, window_params = [{transform_indices = @transform_0, window_bounds = array<i64: 1, 8, 32>}, {transform_indices = @transform_1, window_bounds = array<i64: 1, 8, 32>}, {transform_indices = @transform_2, window_bounds = array<i64: 1, 8, 32>}, {pipeline_mode = #tpu.pipeline_mode<synchronous>, transform_indices = @transform_3, window_bounds = array<i64: 32, 32>}, {pipeline_mode = #tpu.pipeline_mode<synchronous>, transform_indices = @transform_4, window_bounds = array<i64: 1, 32>}, {pipeline_mode = #tpu.pipeline_mode<synchronous>, transform_indices = @transform_5, window_bounds = array<i64: 32, 32>}, {pipeline_mode = #tpu.pipeline_mode<synchronous>, transform_indices = @transform_6, window_bounds = array<i64: 1, 32>}, {pipeline_mode = #tpu.pipeline_mode<synchronous>, transform_indices = @transform_7, window_bounds = array<i64: 32, 32>}, {pipeline_mode = #tpu.pipeline_mode<synchronous>, transform_indices = @transform_8, window_bounds = array<i64: 1, 32>}, {pipeline_mode = #tpu.pipeline_mode<synchronous>, transform_indices = @transform_9, window_bounds = array<i64: 32, 32>}, {pipeline_mode = #tpu.pipeline_mode<synchronous>, transform_indices = @transform_10, window_bounds = array<i64: 1, 32>}, {transform_indices = @transform_11, window_bounds = array<i64: 1, 8, 32>}]} {
    %c0_i32 = arith.constant 0 : i32
    %0 = arith.cmpi eq, %arg1, %c0_i32 : i32
    %1 = arith.extui %0 : i1 to i32
    %c0_i32_0 = arith.constant 0 : i32
    %2 = arith.cmpi ne, %1, %c0_i32_0 : i32
    scf.if %2 {
      %c0_42 = arith.constant 0 : index
      %c0_43 = arith.constant 0 : index
      %c0_44 = arith.constant 0 : index
      %106 = vector.load %arg3[%c0_42, %c0_43, %c0_44] : memref<1x8x32xbf16, #tpu.memory_space<vmem>>, vector<1x8x32xbf16>
      %107 = vector.shape_cast %106 : vector<1x8x32xbf16> to vector<8x32xbf16>
      %c0_45 = arith.constant 0 : index
      %c0_46 = arith.constant 0 : index
      %108 = vector.load %arg7[%c0_45, %c0_46] : memref<32x32xbf16, #tpu.memory_space<vmem>>, vector<32x32xbf16>
      %cst_47 = arith.constant dense<0.000000e+00> : vector<8x32xf32>
      %109 = tpu.matmul %107, %108, %cst_47 {dimension_numbers = #tpu.dot_dimension_numbers<[1], [0], [0], [1], [0, 0, 1, 1], [], []>} : vector<8x32xbf16>, vector<32x32xbf16>, vector<8x32xf32> -> vector<8x32xf32>
      %c0_48 = arith.constant 0 : index
      %c0_49 = arith.constant 0 : index
      %110 = vector.load %arg8[%c0_48, %c0_49] : memref<1x32xf32, #tpu.memory_space<vmem>>, vector<1x32xf32>
      %111 = vector.broadcast %110 : vector<1x32xf32> to vector<8x32xf32>
      %112 = arith.addf %109, %111 : vector<8x32xf32>
      %c0_50 = arith.constant 0 : index
      %c0_51 = arith.constant 0 : index
      %c0_52 = arith.constant 0 : index
      %113 = vector.load %arg4[%c0_50, %c0_51, %c0_52] : memref<1x8x32xbf16, #tpu.memory_space<vmem>>, vector<1x8x32xbf16>
      %114 = vector.shape_cast %113 : vector<1x8x32xbf16> to vector<8x32xbf16>
      %c0_53 = arith.constant 0 : index
      %c0_54 = arith.constant 0 : index
      %115 = vector.load %arg9[%c0_53, %c0_54] : memref<32x32xbf16, #tpu.memory_space<vmem>>, vector<32x32xbf16>
      %cst_55 = arith.constant dense<0.000000e+00> : vector<8x32xf32>
      %116 = tpu.matmul %114, %115, %cst_55 {dimension_numbers = #tpu.dot_dimension_numbers<[1], [0], [0], [1], [0, 0, 1, 1], [], []>} : vector<8x32xbf16>, vector<32x32xbf16>, vector<8x32xf32> -> vector<8x32xf32>
      %c0_56 = arith.constant 0 : index
      %c0_57 = arith.constant 0 : index
      %117 = vector.load %arg10[%c0_56, %c0_57] : memref<1x32xf32, #tpu.memory_space<vmem>>, vector<1x32xf32>
      %118 = vector.broadcast %117 : vector<1x32xf32> to vector<8x32xf32>
      %119 = arith.addf %116, %118 : vector<8x32xf32>
      %120 = arith.truncf %112 : vector<8x32xf32> to vector<8x32xbf16>
      %c0_58 = arith.constant 0 : index
      %c0_59 = arith.constant 0 : index
      %121 = vector.load %arg14[%c0_58, %c0_59] : memref<8x32xbf16, #tpu.memory_space<vmem>>, vector<8x32xbf16>
      tpu.vector_store %arg14[%c0_58, %c0_59], %120 {strides = array<i32>} : memref<8x32xbf16, #tpu.memory_space<vmem>>, vector<8x32xbf16>,
      %122 = arith.truncf %119 : vector<8x32xf32> to vector<8x32xbf16>
      %c0_60 = arith.constant 0 : index
      %c0_61 = arith.constant 0 : index
      %123 = vector.load %arg15[%c0_60, %c0_61] : memref<8x32xbf16, #tpu.memory_space<vmem>>, vector<8x32xbf16>
      tpu.vector_store %arg15[%c0_60, %c0_61], %122 {strides = array<i32>} : memref<8x32xbf16, #tpu.memory_space<vmem>>, vector<8x32xbf16>,
    } else {
    }
    %c0 = arith.constant 0 : index
    %c0_1 = arith.constant 0 : index
    %c0_2 = arith.constant 0 : index
    %3 = vector.load %arg2[%c0, %c0_1, %c0_2] : memref<1x8x32xbf16, #tpu.memory_space<vmem>>, vector<1x8x32xbf16>
    %4 = vector.shape_cast %3 : vector<1x8x32xbf16> to vector<8x32xbf16>
    %c0_3 = arith.constant 0 : index
    %c0_4 = arith.constant 0 : index
    %5 = vector.load %arg5[%c0_3, %c0_4] : memref<32x32xbf16, #tpu.memory_space<vmem>>, vector<32x32xbf16>
    %cst = arith.constant dense<0.000000e+00> : vector<8x32xf32>
    %6 = tpu.matmul %4, %5, %cst {dimension_numbers = #tpu.dot_dimension_numbers<[1], [0], [0], [1], [0, 0, 1, 1], [], []>} : vector<8x32xbf16>, vector<32x32xbf16>, vector<8x32xf32> -> vector<8x32xf32>
    %c0_5 = arith.constant 0 : index
    %c0_6 = arith.constant 0 : index
    %7 = vector.load %arg6[%c0_5, %c0_6] : memref<1x32xf32, #tpu.memory_space<vmem>>, vector<1x32xf32>
    %8 = vector.broadcast %7 : vector<1x32xf32> to vector<8x32xf32>
    %9 = arith.addf %6, %8 : vector<8x32xf32>
    %10 = arith.truncf %9 : vector<8x32xf32> to vector<8x32xbf16>
    %c0_7 = arith.constant 0 : index
    %c0_8 = arith.constant 0 : index
    %11 = vector.load %arg14[%c0_7, %c0_8] : memref<8x32xbf16, #tpu.memory_space<vmem>>, vector<8x32xbf16>
    %c0_9 = arith.constant 0 : index
    %c0_10 = arith.constant 0 : index
    %12 = vector.load %arg15[%c0_9, %c0_10] : memref<8x32xbf16, #tpu.memory_space<vmem>>, vector<8x32xbf16>
    %13 = vector.extract_strided_slice %10 {offsets = [0, 0], sizes = [8, 8], strides = [1, 1]} : vector<8x32xbf16> to vector<8x8xbf16>
    %14 = vector.extract_strided_slice %11 {offsets = [0, 0], sizes = [8, 8], strides = [1, 1]} : vector<8x32xbf16> to vector<8x8xbf16>
    %15 = vector.extract_strided_slice %12 {offsets = [0, 0], sizes = [8, 8], strides = [1, 1]} : vector<8x32xbf16> to vector<8x8xbf16>
    %cst_11 = arith.constant dense<0.000000e+00> : vector<8x8xf32>
    %16 = tpu.matmul %13, %14, %cst_11 {dimension_numbers = #tpu.dot_dimension_numbers<[1], [1], [0], [0], [0, 0, 1, 0], [], []>} : vector<8x8xbf16>, vector<8x8xbf16>, vector<8x8xf32> -> vector<8x8xf32>
    %cst_12 = arith.constant dense<0xFF800000> : vector<8xf32>
    %17 = vector.multi_reduction <maximumf>, %16, %cst_12 [1] : vector<8x8xf32> to vector<8xf32>
    %18 = vector.shape_cast %17 : vector<8xf32> to vector<8x1xf32>
    %19 = vector.broadcast %18 : vector<8x1xf32> to vector<8x8xf32>
    %20 = arith.subf %16, %19 : vector<8x8xf32>
    %21 = arith.truncf %20 : vector<8x8xf32> to vector<8x8xbf16>
    %22 = math.exp %21 : vector<8x8xbf16>
    %23 = arith.extf %22 : vector<8x8xbf16> to vector<8x8xf32>
    %cst_13 = arith.constant dense<0.000000e+00> : vector<8xf32>
    %24 = vector.multi_reduction <add>, %23, %cst_13 [1] : vector<8x8xf32> to vector<8xf32>
    %25 = vector.shape_cast %24 : vector<8xf32> to vector<8x1xf32>
    %26 = tpu.reciprocal %25 {approx = true} : vector<8x1xf32> -> vector<8x1xf32>
    %27 = arith.extf %22 : vector<8x8xbf16> to vector<8x8xf32>
    %28 = vector.broadcast %26 : vector<8x1xf32> to vector<8x8xf32>
    %29 = arith.mulf %27, %28 : vector<8x8xf32>
    %30 = arith.truncf %29 : vector<8x8xf32> to vector<8x8xbf16>
    %cst_14 = arith.constant dense<0.000000e+00> : vector<8x8xf32>
    %31 = tpu.matmul %30, %15, %cst_14 {dimension_numbers = #tpu.dot_dimension_numbers<[1], [0], [0], [1], [0, 0, 1, 1], [], []>} : vector<8x8xbf16>, vector<8x8xbf16>, vector<8x8xf32> -> vector<8x8xf32>
    %32 = arith.truncf %31 : vector<8x8xf32> to vector<8x8xbf16>
    %c0_15 = arith.constant 0 : index
    %c0_16 = arith.constant 0 : index
    %33 = vector.load %arg16[%c0_15, %c0_16] : memref<8x32xbf16, #tpu.memory_space<vmem>>, vector<8x8xbf16>
    tpu.vector_store %arg16[%c0_15, %c0_16], %32 {strides = array<i32>} : memref<8x32xbf16, #tpu.memory_space<vmem>>, vector<8x8xbf16>,
    %34 = vector.extract_strided_slice %10 {offsets = [0, 8], sizes = [8, 8], strides = [1, 1]} : vector<8x32xbf16> to vector<8x8xbf16>
    %35 = vector.extract_strided_slice %11 {offsets = [0, 8], sizes = [8, 8], strides = [1, 1]} : vector<8x32xbf16> to vector<8x8xbf16>
    %36 = vector.extract_strided_slice %12 {offsets = [0, 8], sizes = [8, 8], strides = [1, 1]} : vector<8x32xbf16> to vector<8x8xbf16>
    %cst_17 = arith.constant dense<0.000000e+00> : vector<8x8xf32>
    %37 = tpu.matmul %34, %35, %cst_17 {dimension_numbers = #tpu.dot_dimension_numbers<[1], [1], [0], [0], [0, 0, 1, 0], [], []>} : vector<8x8xbf16>, vector<8x8xbf16>, vector<8x8xf32> -> vector<8x8xf32>
    %cst_18 = arith.constant dense<0xFF800000> : vector<8xf32>
    %38 = vector.multi_reduction <maximumf>, %37, %cst_18 [1] : vector<8x8xf32> to vector<8xf32>
    %39 = vector.shape_cast %38 : vector<8xf32> to vector<8x1xf32>
    %40 = vector.broadcast %39 : vector<8x1xf32> to vector<8x8xf32>
    %41 = arith.subf %37, %40 : vector<8x8xf32>
    %42 = arith.truncf %41 : vector<8x8xf32> to vector<8x8xbf16>
    %43 = math.exp %42 : vector<8x8xbf16>
    %44 = arith.extf %43 : vector<8x8xbf16> to vector<8x8xf32>
    %cst_19 = arith.constant dense<0.000000e+00> : vector<8xf32>
    %45 = vector.multi_reduction <add>, %44, %cst_19 [1] : vector<8x8xf32> to vector<8xf32>
    %46 = vector.shape_cast %45 : vector<8xf32> to vector<8x1xf32>
    %47 = tpu.reciprocal %46 {approx = true} : vector<8x1xf32> -> vector<8x1xf32>
    %48 = arith.extf %43 : vector<8x8xbf16> to vector<8x8xf32>
    %49 = vector.broadcast %47 : vector<8x1xf32> to vector<8x8xf32>
    %50 = arith.mulf %48, %49 : vector<8x8xf32>
    %51 = arith.truncf %50 : vector<8x8xf32> to vector<8x8xbf16>
    %cst_20 = arith.constant dense<0.000000e+00> : vector<8x8xf32>
    %52 = tpu.matmul %51, %36, %cst_20 {dimension_numbers = #tpu.dot_dimension_numbers<[1], [0], [0], [1], [0, 0, 1, 1], [], []>} : vector<8x8xbf16>, vector<8x8xbf16>, vector<8x8xf32> -> vector<8x8xf32>
    %53 = arith.truncf %52 : vector<8x8xf32> to vector<8x8xbf16>
    %c0_21 = arith.constant 0 : index
    %c8 = arith.constant 8 : index
    %54 = vector.load %arg16[%c0_21, %c8] : memref<8x32xbf16, #tpu.memory_space<vmem>>, vector<8x8xbf16>
    tpu.vector_store %arg16[%c0_21, %c8], %53 {strides = array<i32>} : memref<8x32xbf16, #tpu.memory_space<vmem>>, vector<8x8xbf16>,
    %55 = vector.extract_strided_slice %10 {offsets = [0, 16], sizes = [8, 8], strides = [1, 1]} : vector<8x32xbf16> to vector<8x8xbf16>
    %56 = vector.extract_strided_slice %11 {offsets = [0, 16], sizes = [8, 8], strides = [1, 1]} : vector<8x32xbf16> to vector<8x8xbf16>
    %57 = vector.extract_strided_slice %12 {offsets = [0, 16], sizes = [8, 8], strides = [1, 1]} : vector<8x32xbf16> to vector<8x8xbf16>
    %cst_22 = arith.constant dense<0.000000e+00> : vector<8x8xf32>
    %58 = tpu.matmul %55, %56, %cst_22 {dimension_numbers = #tpu.dot_dimension_numbers<[1], [1], [0], [0], [0, 0, 1, 0], [], []>} : vector<8x8xbf16>, vector<8x8xbf16>, vector<8x8xf32> -> vector<8x8xf32>
    %cst_23 = arith.constant dense<0xFF800000> : vector<8xf32>
    %59 = vector.multi_reduction <maximumf>, %58, %cst_23 [1] : vector<8x8xf32> to vector<8xf32>
    %60 = vector.shape_cast %59 : vector<8xf32> to vector<8x1xf32>
    %61 = vector.broadcast %60 : vector<8x1xf32> to vector<8x8xf32>
    %62 = arith.subf %58, %61 : vector<8x8xf32>
    %63 = arith.truncf %62 : vector<8x8xf32> to vector<8x8xbf16>
    %64 = math.exp %63 : vector<8x8xbf16>
    %65 = arith.extf %64 : vector<8x8xbf16> to vector<8x8xf32>
    %cst_24 = arith.constant dense<0.000000e+00> : vector<8xf32>
    %66 = vector.multi_reduction <add>, %65, %cst_24 [1] : vector<8x8xf32> to vector<8xf32>
    %67 = vector.shape_cast %66 : vector<8xf32> to vector<8x1xf32>
    %68 = tpu.reciprocal %67 {approx = true} : vector<8x1xf32> -> vector<8x1xf32>
    %69 = arith.extf %64 : vector<8x8xbf16> to vector<8x8xf32>
    %70 = vector.broadcast %68 : vector<8x1xf32> to vector<8x8xf32>
    %71 = arith.mulf %69, %70 : vector<8x8xf32>
    %72 = arith.truncf %71 : vector<8x8xf32> to vector<8x8xbf16>
    %cst_25 = arith.constant dense<0.000000e+00> : vector<8x8xf32>
    %73 = tpu.matmul %72, %57, %cst_25 {dimension_numbers = #tpu.dot_dimension_numbers<[1], [0], [0], [1], [0, 0, 1, 1], [], []>} : vector<8x8xbf16>, vector<8x8xbf16>, vector<8x8xf32> -> vector<8x8xf32>
    %74 = arith.truncf %73 : vector<8x8xf32> to vector<8x8xbf16>
    %c0_26 = arith.constant 0 : index
    %c16 = arith.constant 16 : index
    %75 = vector.load %arg16[%c0_26, %c16] : memref<8x32xbf16, #tpu.memory_space<vmem>>, vector<8x8xbf16>
    tpu.vector_store %arg16[%c0_26, %c16], %74 {strides = array<i32>} : memref<8x32xbf16, #tpu.memory_space<vmem>>, vector<8x8xbf16>,
    %76 = vector.extract_strided_slice %10 {offsets = [0, 24], sizes = [8, 8], strides = [1, 1]} : vector<8x32xbf16> to vector<8x8xbf16>
    %77 = vector.extract_strided_slice %11 {offsets = [0, 24], sizes = [8, 8], strides = [1, 1]} : vector<8x32xbf16> to vector<8x8xbf16>
    %78 = vector.extract_strided_slice %12 {offsets = [0, 24], sizes = [8, 8], strides = [1, 1]} : vector<8x32xbf16> to vector<8x8xbf16>
    %cst_27 = arith.constant dense<0.000000e+00> : vector<8x8xf32>
    %79 = tpu.matmul %76, %77, %cst_27 {dimension_numbers = #tpu.dot_dimension_numbers<[1], [1], [0], [0], [0, 0, 1, 0], [], []>} : vector<8x8xbf16>, vector<8x8xbf16>, vector<8x8xf32> -> vector<8x8xf32>
    %cst_28 = arith.constant dense<0xFF800000> : vector<8xf32>
    %80 = vector.multi_reduction <maximumf>, %79, %cst_28 [1] : vector<8x8xf32> to vector<8xf32>
    %81 = vector.shape_cast %80 : vector<8xf32> to vector<8x1xf32>
    %82 = vector.broadcast %81 : vector<8x1xf32> to vector<8x8xf32>
    %83 = arith.subf %79, %82 : vector<8x8xf32>
    %84 = arith.truncf %83 : vector<8x8xf32> to vector<8x8xbf16>
    %85 = math.exp %84 : vector<8x8xbf16>
    %86 = arith.extf %85 : vector<8x8xbf16> to vector<8x8xf32>
    %cst_29 = arith.constant dense<0.000000e+00> : vector<8xf32>
    %87 = vector.multi_reduction <add>, %86, %cst_29 [1] : vector<8x8xf32> to vector<8xf32>
    %88 = vector.shape_cast %87 : vector<8xf32> to vector<8x1xf32>
    %89 = tpu.reciprocal %88 {approx = true} : vector<8x1xf32> -> vector<8x1xf32>
    %90 = arith.extf %85 : vector<8x8xbf16> to vector<8x8xf32>
    %91 = vector.broadcast %89 : vector<8x1xf32> to vector<8x8xf32>
    %92 = arith.mulf %90, %91 : vector<8x8xf32>
    %93 = arith.truncf %92 : vector<8x8xf32> to vector<8x8xbf16>
    %cst_30 = arith.constant dense<0.000000e+00> : vector<8x8xf32>
    %94 = tpu.matmul %93, %78, %cst_30 {dimension_numbers = #tpu.dot_dimension_numbers<[1], [0], [0], [1], [0, 0, 1, 1], [], []>} : vector<8x8xbf16>, vector<8x8xbf16>, vector<8x8xf32> -> vector<8x8xf32>
    %95 = arith.truncf %94 : vector<8x8xf32> to vector<8x8xbf16>
    %c0_31 = arith.constant 0 : index
    %c24 = arith.constant 24 : index
    %96 = vector.load %arg16[%c0_31, %c24] : memref<8x32xbf16, #tpu.memory_space<vmem>>, vector<8x8xbf16>
    tpu.vector_store %arg16[%c0_31, %c24], %95 {strides = array<i32>} : memref<8x32xbf16, #tpu.memory_space<vmem>>, vector<8x8xbf16>,
    %c0_32 = arith.constant 0 : index
    %c0_33 = arith.constant 0 : index
    %97 = vector.load %arg16[%c0_32, %c0_33] : memref<8x32xbf16, #tpu.memory_space<vmem>>, vector<8x32xbf16>
    %c0_34 = arith.constant 0 : index
    %c0_35 = arith.constant 0 : index
    %98 = vector.load %arg11[%c0_34, %c0_35] : memref<32x32xbf16, #tpu.memory_space<vmem>>, vector<32x32xbf16>
    %cst_36 = arith.constant dense<0.000000e+00> : vector<8x32xf32>
    %99 = tpu.matmul %97, %98, %cst_36 {dimension_numbers = #tpu.dot_dimension_numbers<[1], [0], [0], [1], [0, 0, 1, 1], [], []>} : vector<8x32xbf16>, vector<32x32xbf16>, vector<8x32xf32> -> vector<8x32xf32>
    %c0_37 = arith.constant 0 : index
    %c0_38 = arith.constant 0 : index
    %100 = vector.load %arg12[%c0_37, %c0_38] : memref<1x32xf32, #tpu.memory_space<vmem>>, vector<1x32xf32>
    %101 = vector.broadcast %100 : vector<1x32xf32> to vector<8x32xf32>
    %102 = arith.addf %99, %101 : vector<8x32xf32>
    %c0_39 = arith.constant 0 : index
    %c0_40 = arith.constant 0 : index
    %c0_41 = arith.constant 0 : index
    %103 = vector.load %arg13[%c0_39, %c0_40, %c0_41] : memref<1x8x32xf32, #tpu.memory_space<vmem>>, vector<1x8x32xf32>
    %104 = vector.shape_cast %103 : vector<1x8x32xf32> to vector<8x32xf32>
    %105 = vector.shape_cast %102 : vector<8x32xf32> to vector<1x8x32xf32>
    tpu.vector_store %arg13[%c0_39, %c0_40, %c0_41], %105 {strides = array<i32>} : memref<1x8x32xf32, #tpu.memory_space<vmem>>, vector<1x8x32xf32>,
    return
  }
  func.func @transform_0(%arg0: i32, %arg1: i32) -> (i32, i32, i32) {
    %c0_i32 = arith.constant 0 : i32
    %c0_i32_0 = arith.constant 0 : i32
    return %arg0, %arg1, %c0_i32 : i32, i32, i32
  }
  func.func @transform_1(%arg0: i32, %arg1: i32) -> (i32, i32, i32) {
    %c0_i32 = arith.constant 0 : i32
    %c0_i32_0 = arith.constant 0 : i32
    %c0_i32_1 = arith.constant 0 : i32
    return %arg0, %c0_i32, %c0_i32_0 : i32, i32, i32
  }
  func.func @transform_2(%arg0: i32, %arg1: i32) -> (i32, i32, i32) {
    %c0_i32 = arith.constant 0 : i32
    %c0_i32_0 = arith.constant 0 : i32
    %c0_i32_1 = arith.constant 0 : i32
    return %arg0, %c0_i32, %c0_i32_0 : i32, i32, i32
  }
  func.func @transform_3(%arg0: i32, %arg1: i32) -> (i32, i32) {
    %c0_i32 = arith.constant 0 : i32
    %c0_i32_0 = arith.constant 0 : i32
    %c0_i32_1 = arith.constant 0 : i32
    return %c0_i32, %c0_i32_0 : i32, i32
  }
  func.func @transform_4(%arg0: i32, %arg1: i32) -> (i32, i32) {
    %c0_i32 = arith.constant 0 : i32
    %c0_i32_0 = arith.constant 0 : i32
    %c0_i32_1 = arith.constant 0 : i32
    return %c0_i32, %c0_i32_0 : i32, i32
  }
  func.func @transform_5(%arg0: i32, %arg1: i32) -> (i32, i32) {
    %c0_i32 = arith.constant 0 : i32
    %c0_i32_0 = arith.constant 0 : i32
    %c0_i32_1 = arith.constant 0 : i32
    return %c0_i32, %c0_i32_0 : i32, i32
  }
  func.func @transform_6(%arg0: i32, %arg1: i32) -> (i32, i32) {
    %c0_i32 = arith.constant 0 : i32
    %c0_i32_0 = arith.constant 0 : i32
    %c0_i32_1 = arith.constant 0 : i32
    return %c0_i32, %c0_i32_0 : i32, i32
  }
  func.func @transform_7(%arg0: i32, %arg1: i32) -> (i32, i32) {
    %c0_i32 = arith.constant 0 : i32
    %c0_i32_0 = arith.constant 0 : i32
    %c0_i32_1 = arith.constant 0 : i32
    return %c0_i32, %c0_i32_0 : i32, i32
  }
  func.func @transform_8(%arg0: i32, %arg1: i32) -> (i32, i32) {
    %c0_i32 = arith.constant 0 : i32
    %c0_i32_0 = arith.constant 0 : i32
    %c0_i32_1 = arith.constant 0 : i32
    return %c0_i32, %c0_i32_0 : i32, i32
  }
  func.func @transform_9(%arg0: i32, %arg1: i32) -> (i32, i32) {
    %c0_i32 = arith.constant 0 : i32
    %c0_i32_0 = arith.constant 0 : i32
    %c0_i32_1 = arith.constant 0 : i32
    return %c0_i32, %c0_i32_0 : i32, i32
  }
  func.func @transform_10(%arg0: i32, %arg1: i32) -> (i32, i32) {
    %c0_i32 = arith.constant 0 : i32
    %c0_i32_0 = arith.constant 0 : i32
    %c0_i32_1 = arith.constant 0 : i32
    return %c0_i32, %c0_i32_0 : i32, i32
  }
  func.func @transform_11(%arg0: i32, %arg1: i32) -> (i32, i32, i32) {
    %c0_i32 = arith.constant 0 : i32
    %c0_i32_0 = arith.constant 0 : i32
    return %arg0, %arg1, %c0_i32 : i32, i32, i32
  }
}

</mosaic_0001>

<bundles_post_ra>
// kernel: tpu_custom_call.1
= control target key start
LH: loop header
LB: loop body
LE: loop exit
PB: predicated region body
PF: predicated region fallthrough
CT: control target
= control target key end

     0   :  { %s2561_s0 = inlined_call_operand.hbm [shape: bf16[2,8,32], index: 0, kind: input, shape index: {}]   ;;  %s2562_s1 = inlined_call_operand.hbm [shape: bf16[2,8,32], index: 1, kind: input, shape index: {}]   ;;  %s2563_s2 = inlined_call_operand.hbm [shape: bf16[2,8,32], index: 2, kind: input, shape index: {}]   ;;  %s2564_s3 = inlined_call_operand.hbm [shape: bf16[32,32], index: 3, kind: input, shape index: {}]   ;;  %s2565_s4 = inlined_call_operand.vmem [shape: f32[1,32], index: 4, kind: input, shape index: {}]   ;;  %s2566_s5 = inlined_call_operand.vmem [shape: bf16[32,32], index: 5, kind: input, shape index: {}]   ;;  %s2567_s6 = inlined_call_operand.vmem [shape: f32[1,32], index: 6, kind: input, shape index: {}]   ;;  %s2568_s7 = inlined_call_operand.hbm [shape: bf16[32,32], index: 7, kind: input, shape index: {}]   ;;  %s2569_s8 = inlined_call_operand.hbm [shape: f32[1,32], index: 8, kind: input, shape index: {}]   ;;  %s2570_s9 = inlined_call_operand.vmem [shape: bf16[32,32], index: 9, kind: input, shape index: {}]   ;;  %s2571_s10 = inlined_call_operand.vmem [shape: f32[1,32], index: 10, kind: input, shape index: {}]   ;;  %s2572_s11 = inlined_call_operand.hbm [shape: f32[2,8,32], index: 11, kind: output, shape index: {}]  }
   0x1   :  { %2598 = sst [smem:[#allocation30_spill]] %s2562_s1 }
   0x2   :  { %2599 = sst [smem:[#allocation31_spill]] %s2564_s3 }
   0x3   :  { %2600 = sst [smem:[#allocation32_spill]] %s2565_s4 }
   0x4   :  { %2601 = sst [smem:[#allocation33_spill]] %s2567_s6 }
   0x5   :  { %2602 = sst [smem:[#allocation34_spill]] %s2570_s9 }
   0x6   :  { %2603 = sst [smem:[#allocation35_spill]] %s2571_s10 }
   0x7   :  { %2604 = sst [smem:[#allocation36_spill]] %s2572_s11 }
   0x8   :  { %16 = vsyncpa [#allocation6], 0 }
   0x9   :  { %18 = vsyncpa [#allocation6 + $0x1], 0 }
   0xa   :  { %19 = vsyncpa [#allocation9], 0 }
   0xb   :  { %21 = vsyncpa [#allocation9 + $0x1], 0 }
   0xc   :  { %22 = vsyncpa [#allocation12], 0 }
   0xd   :  { %23 = vsyncpa [#allocation15], 0 }
   0xe   :  { %24 = vsyncpa [#allocation7], 0 }
   0xf   :  { %26 = vsyncpa [#allocation7 + $0x1], 0  ;;  %s2119_s17 = smov 0   ;;  %s2121_s18 = smov 0  }
  0x10   :  { %s2123_s19 = smov 0   ;;  %s2125_s20 = smov 0  }
  0x11   :  { %s2127_s21 = smov 0   ;;  %s2129_s22 = smov 0  }
  0x12 LB: > { %2605 = sst [smem:[#allocation22_spill]] %s2020_s17  ;;  %s2150_s23 = sadd.s32 4294967295, %s2040_s22   ;;  %s2040_s22 = sphi %s2129_s22, %s32_s22   ;;  %s2036_s21 = sphi %s2127_s21, %s2653_s21   ;;  %s2032_s20 = sphi %s2125_s20, %s2652_s20   ;;  %s2028_s19 = sphi %s2123_s19, %s2656_s19   ;;  %s2024_s18 = sphi %s2121_s18, %s2655_s18   ;;  %s2020_s17 = sphi %s2119_s17, %s2654_s17  }
  0x13   : > { %2606 = sst [smem:[#allocation23_spill]] %s2032_s20  ;;  %s1469_s24 = sadd.s32 4294967294, %s2040_s22  }
  0x14   : > { %2607 = sst [smem:[#allocation24_spill]] %s2036_s21  ;;  %p66_p0 = scmp.ne.s32.totalorder %s2024_s18, %s2020_s17 }
  0x15   : > { %2608 = sst [smem:[#allocation25_spill]] %s2040_s22  ;;  %p2575_p1 = scmp.eq.s32.totalorder %s2150_s23, 0 }
  0x16   : > { %p318_p3 = scmp.eq.s32.totalorder %s1469_s24, 1  ;;  %p1470_p5 = scmp.ge.s32.totalorder %s2040_s22, 1 }
  0x17   : > { %p2159_p4 = por %p2575_p1, %p66_p0  ;;  %p325_p7 = scmp.lt.s32.totalorder %s2040_s22, 3 }
  0x18   : > { %p2164_p6 = por %p318_p3, %p66_p0  ;;  %s2042_s28 = smov [#allocation11]  }
  0x19   : > { %s2609_s25 = scalar_select %p2159_p4, 1, 0 }
  0x1a   : > { %s2610_s26 = scalar_select %p2164_p6, 1, 0 }
  0x1b   : > { %p2169_p8 = pnand %p1470_p5, %p325_p7  ;;  %s337_s29 = sshll.u32 %s2042_s28, 4  ;;  %s338_s29 = int_to_ptr.vmem [resolvable:$true] %s337_s29 }
  0x1c   : > { %2611 = sst [smem:[#allocation26_spill]] %s2610_s26  ;;  %s44_s12 = sadd.s32 1, %s2036_s21 }
  0x1d   : > { %s2612_s27 = scalar_select %p2169_p8, 1, 0 }
  0x1e   : > { %p1653_p9 = pneg %p2169_p8  ;;  %s2614_s3 = sld [smem:[#allocation31_spill]] }
  0x20   : > { %p2178_p11 = pnand %p1653_p9, %p2575_p1 }
  0x22   : > { %s2613_s30 = scalar_select %p2178_p11, 1, 0 }
  0x23   : > { %p2191_p13 = pneg %p2178_p11 }
  0x24   : > { %s1772_s15 = scalar_lea.hbm %s2614_s3, 256 }
  0x25   : > { %p1773_p12 = scmp.ne.s32.totalorder %s2614_s3, %s1772_s15  ;;  %p1779_p5 = scmp.lt.u32.totalorder %s1772_s15, %s2614_s3 }
  0x26   : > { %s2615_s28 = scalar_select %p2191_p13, 1, 0 }
  0x27   : > { %p1775_p0 = pnand %p2191_p13, %p1773_p12 }
  0x29   : > { %p1776_p3 = pneg %p1775_p0 }
  0x2b   : > { %p1781_p7 = pnand %p1779_p5, %p1776_p3 }
  0x2d   : > { %1784 = shalt.err (!%p1781_p7)
}
  0x2e   : > { %s1785_s13 = scalar_lea.vmem %s338_s29, 256  ;;  %p1793_p2 = scmp.lt.s32.totalorder %s338_s29, %s338_s29 }
  0x2f   : > { %p1786_p9 = scmp.ne.s32.totalorder %s338_s29, %s1785_s13  ;;  %p1794_p6 = scmp.lt.s32.totalorder %s1785_s13, %s1785_s13 }
  0x31   : > { %p1788_p10 = pnand %p1786_p9, %p2191_p13  ;;  %p1795_p4 = por %p1794_p6, %p1793_p2 }
  0x33   : > { %p1789_p1 = pneg %p1788_p10 }
  0x35   : > { %p1796_p8 = pnand %p1795_p4, %p1789_p1 }
  0x37   : > { %1799 = shalt.err (!%p1796_p8)
}
  0x38   : > { %s2579_s14 = smov 64   ;;  %s2580_s17 = smov 4  }
  0x39   : > { %1656 = dma.hbm_to_vmem [thread:$0]  (!%p2178_p11), %s2614_s3, 256, %s338_s29, [#allocation12], %s2579_s14, %s2579_s14, %s2580_s17  }
  0x3a   : > { %p46_p1 = scmp.ge.s32.totalorder %s44_s12, 2  ;;  %s53_s16 = sadd.s32 1, %s2028_s19 }
  0x3b   : > { %p60_p2 = scmp.ne.s32.totalorder %s2028_s19, %s2024_s18  ;;  %p61_p4 = scmp.eq.s32.totalorder %s2040_s22, 0 }
  0x3c   : > { %s2658_s12 = smov (%p46_p1, %s44_s12), 0  ;;  %p2617_p8 = scmp.eq.s32.totalorder %s2150_s23, 1 }
  0x3d   : > { %2616 = sst [smem:[#allocation27_spill]] %s2658_s12  ;;  %p62_p6 = por %p61_p4, %p60_p2 }
  0x3e   : > { %p2218_p10 = por %p2617_p8, %p60_p2  ;;  %s48_s13 = ssub.s32 %s2036_s21, %s2658_s12 }
  0x3f   : > { %p1680_p12 = scmp.lt.s32.totalorder %s2040_s22, 2  ;;  %p51_p0 = scmp.eq.s32.totalorder %s48_s13, 0 }
  0x40   : > { %s2618_s24 = scalar_select %p2218_p10, 1, 0 }
  0x41   : > { %s2582_s11 = sand.u32 1, %s2028_s19   ;;  %s2231_s26 = sshll.u32 %s2036_s21, 6 }
  0x42   : > { %2619 = sst [smem:[#allocation28_spill]] %s2618_s24  ;;  %s2228_s29 = sshll.u32 %s2582_s11, 2 }
  0x43   : > { %s2234_s15 = scalar_select %p51_p0, %s2028_s19, %s53_s16  }
  0x44   : > { %p2236_p3 = pnand %p1680_p12, %p62_p6  ;;  %s409_s17 = sand.u32 1, %s2040_s22  }
  0x45   : > { %2620 = sst [smem:[#allocation29_spill]] %s2234_s15  ;;  %s2622_s1 = sld [smem:[#allocation30_spill]] }
  0x46   : > { %s2621_s14 = scalar_select %p2236_p3, 1, 0 }
  0x47   : > { %s413_s11 = scalar_lea.vmem [#allocation8], %s2228_s29  ;;  %s2045_s16 = smov [#allocation13]  }
  0x48   : > { %s420_s21 = sshll.u32 %s413_s11, 4  ;;  %s2250_s15 = sshll.u32 %s2045_s16, 4  ;;  %s2248_s21 = int_to_ptr.vmem [resolvable:$true] %s420_s21  ;;  %s360_s15 = int_to_ptr.vmem [resolvable:$true] %s2250_s15 }
  0x49   : > { %s2252_s24 = scalar_lea.sflag [#allocation9], %s409_s17  ;;  %p2258_p7 = pneg %p2236_p3 }
  0x4b   : > { %s2245_s13 = scalar_lea.hbm %s2622_s1, %s2231_s26  ;;  %s1805_s22 = scalar_lea.hbm %s2622_s1, 128 }
  0x4c   : > { %s1800_s10 = scalar_lea.hbm %s2245_s13, 64  ;;  %p1806_p2 = scmp.lt.u32.totalorder %s2245_s13, %s2622_s1 }
  0x4d   : > { %p1801_p5 = scmp.ne.s32.totalorder %s2245_s13, %s1800_s10  ;;  %p1807_p4 = scmp.lt.u32.totalorder %s1805_s22, %s1800_s10 }
  0x4e   : > { %s2623_s3 = scalar_select %p2258_p7, 1, 0 }
  0x4f   : > { %p1803_p9 = pnand %p2258_p7, %p1801_p5  ;;  %p1808_p6 = por %p1807_p4, %p1806_p2 }
  0x50   : > { %p1809_p8 = scmp.lt.u32.totalorder %s1800_s10, %s2245_s13 }
  0x51   : > { %p1804_p1 = pneg %p1803_p9 }
  0x52   : > { %p1810_p12 = por %p1809_p8, %p1808_p6 }
  0x54   : > { %p1811_p0 = pnand %p1810_p12, %p1804_p1 }
  0x56   : > { %1814 = shalt.err (!%p1811_p0)
}
  0x57   : > { %s1815_s17 = scalar_lea.vmem %s2248_s21, 64  ;;  %s2046_s12 = smov [#allocation8]  }
  0x58   : > { %p1816_p5 = scmp.ne.s32.totalorder %s2248_s21, %s1815_s17  ;;  %s1820_s11 = sshll.u32 %s2046_s12, 4  ;;  %s1821_s11 = int_to_ptr.vmem [resolvable:$false] %s1820_s11 }
  0x59   : > { %s1822_s20 = scalar_lea.vmem %s1821_s11, 128  ;;  %p1823_p11 = scmp.lt.s32.totalorder %s2248_s21, %s1821_s11 }
  0x5a   : > { %p1818_p9 = pnand %p1816_p5, %p2258_p7  ;;  %p1824_p13 = scmp.lt.s32.totalorder %s1822_s20, %s1815_s17 }
  0x5c   : > { %p1819_p10 = pneg %p1818_p9  ;;  %p1825_p2 = por %p1824_p13, %p1823_p11 }
  0x5e   : > { %p1826_p4 = pnand %p1825_p2, %p1819_p10 }
  0x60   : > { %1829 = shalt.err (!%p1826_p4)
}
  0x61   : > { %1669 = dma.hbm_to_vmem [thread:$0]  (!%p2236_p3), %s2245_s13, 64, %s2248_s21, %s2252_s24  }
  0x62   : > { %s1830_s16 = scalar_lea.hbm %s2568_s7, 256  ;;  %p2624_p11 = scmp.ne.s32.totalorder %s2615_s28, 0 }
  0x63   : > { %p1831_p1 = scmp.ne.s32.totalorder %s2568_s7, %s1830_s16  ;;  %p1837_p6 = scmp.lt.u32.totalorder %s1830_s16, %s2568_s7 }
  0x65   : > { %p1833_p13 = pnand %p1831_p1, %p2624_p11 }
  0x67   : > { %p1834_p10 = pneg %p1833_p13 }
  0x69   : > { %p1839_p8 = pnand %p1837_p6, %p1834_p10 }
  0x6b   : > { %1842 = shalt.err (!%p1839_p8)
}
  0x6c   : > { %s1843_s20 = scalar_lea.vmem %s360_s15, 256  ;;  %p1851_p9 = scmp.lt.s32.totalorder %s360_s15, %s360_s15 }
  0x6d   : > { %p1844_p12 = scmp.ne.s32.totalorder %s360_s15, %s1843_s20  ;;  %p1852_p2 = scmp.lt.s32.totalorder %s1843_s20, %s1843_s20 }
  0x6f   : > { %p1846_p0 = pnand %p1844_p12, %p2624_p11  ;;  %p1853_p4 = por %p1852_p2, %p1851_p9 }
  0x71   : > { %p1847_p5 = pneg %p1846_p0 }
  0x73   : > { %p1854_p3 = pnand %p1853_p4, %p1847_p5 }
  0x75   : > { %1857 = shalt.err (!%p1854_p3)
}
  0x76   : > { %p2625_p1 = scmp.ne.s32.totalorder %s2613_s30, 0  ;;  %s2626_s1 = smov 4  }
  0x77   : > { %s2627_s21 = smov 64   ;;  %s2047_s22 = smov [#allocation14]  }
  0x78   : > { %1659 = dma.hbm_to_vmem [thread:$0]  (!%p2625_p1), %s2568_s7, 256, %s360_s15, [#allocation12], %s2627_s21, %s2627_s21, %s2626_s1  }
  0x79   : > { %s373_s16 = sshll.u32 %s2047_s22, 4  ;;  %s1858_s11 = scalar_lea.hbm %s2569_s8, 16  ;;  %s374_s16 = int_to_ptr.vmem [resolvable:$true] %s373_s16 }
  0x7a   : > { %p1859_p3 = scmp.ne.s32.totalorder %s2569_s8, %s1858_s11  ;;  %p1865_p6 = scmp.lt.u32.totalorder %s1858_s11, %s2569_s8 }
  0x7c   : > { %p1861_p13 = pnand %p1859_p3, %p2624_p11 }
  0x7e   : > { %p1862_p10 = pneg %p1861_p13 }
  0x80   : > { %p1867_p8 = pnand %p1865_p6, %p1862_p10 }
  0x82   : > { %1870 = shalt.err (!%p1867_p8)
}
  0x83   : > { %s1871_s15 = scalar_lea.vmem %s374_s16, 16  ;;  %s1878_s1 = scalar_lea.vmem %s374_s16, 32 }
  0x84   : > { %p1872_p12 = scmp.ne.s32.totalorder %s374_s16, %s1871_s15  ;;  %p1879_p9 = scmp.lt.s32.totalorder %s374_s16, %s374_s16 }
  0x85   : > { %p1880_p2 = scmp.lt.s32.totalorder %s1878_s1, %s1871_s15 }
  0x86   : > { %p1874_p0 = pnand %p1872_p12, %p2624_p11 }
  0x87   : > { %p1881_p4 = por %p1880_p2, %p1879_p9 }
  0x88   : > { %p1875_p5 = pneg %p1874_p0 }
  0x8a   : > { %p1882_p7 = pnand %p1881_p4, %p1875_p5 }
  0x8c   : > { %1885 = shalt.err (!%p1882_p7)
}
  0x8d   : > { %1662 = dma.hbm_to_vmem [thread:$0]  (!%p2625_p1), %s2569_s8, 16, %s374_s16, [#allocation15]  }
  0x8e   : > { %s2326_s28 = scalar_lea.hbm %s2561_s0, %s2231_s26  ;;  %s394_s13 = scalar_lea.vmem [#allocation5], %s2228_s29 }
  0x8f   : > { %s402_s10 = sshll.u32 %s394_s13, 4  ;;  %s2628_s30 = sand.u32 1, %s2028_s19   ;;  %s403_s10 = int_to_ptr.vmem [resolvable:$true] %s402_s10 }
  0x90   : > { %s391_s22 = scalar_lea.sflag [#allocation6], %s2628_s30  ;;  %s1886_s12 = scalar_lea.hbm %s2326_s28, 64 }
  0x91   : > { %p1887_p7 = scmp.ne.s32.totalorder %s2326_s28, %s1886_s12  ;;  %p2629_p11 = scmp.ne.s32.totalorder %s2623_s3, 0 }
  0x92   : > { %s1891_s11 = scalar_lea.hbm %s2561_s0, 128  ;;  %p1892_p1 = scmp.lt.u32.totalorder %s2326_s28, %s2561_s0 }
  0x93   : > { %p1889_p3 = pnand %p1887_p7, %p2629_p11  ;;  %p1893_p10 = scmp.lt.u32.totalorder %s1891_s11, %s1886_s12 }
  0x94   : > { %p1895_p8 = scmp.lt.u32.totalorder %s1886_s12, %s2326_s28 }
  0x95   : > { %p1890_p13 = pneg %p1889_p3  ;;  %p1894_p6 = por %p1893_p10, %p1892_p1 }
  0x97   : > { %p1896_p12 = por %p1895_p8, %p1894_p6 }
  0x99   : > { %p1897_p0 = pnand %p1896_p12, %p1890_p13 }
  0x9b   : > { %1900 = shalt.err (!%p1897_p0)
}
  0x9c   : > { %s1901_s1 = scalar_lea.vmem %s403_s10, 64  ;;  %s2048_s9 = smov [#allocation5]  }
  0x9d   : > { %p1902_p5 = scmp.ne.s32.totalorder %s403_s10, %s1901_s1  ;;  %s1906_s21 = sshll.u32 %s2048_s9, 4  ;;  %s1907_s21 = int_to_ptr.vmem [resolvable:$false] %s1906_s21 }
  0x9e   : > { %s1908_s4 = scalar_lea.vmem %s1907_s21, 128  ;;  %p1909_p4 = scmp.lt.s32.totalorder %s403_s10, %s1907_s21 }
  0x9f   : > { %p1904_p9 = pnand %p1902_p5, %p2629_p11  ;;  %p1910_p7 = scmp.lt.s32.totalorder %s1908_s4, %s1901_s1 }
  0xa1   : > { %p1905_p2 = pneg %p1904_p9  ;;  %p1911_p3 = por %p1910_p7, %p1909_p4 }
  0xa3   : > { %p1912_p1 = pnand %p1911_p3, %p1905_p2 }
  0xa5   : > { %1915 = shalt.err (!%p1912_p1)
}
  0xa6   : > { %p2630_p10 = scmp.ne.s32.totalorder %s2621_s14, 0  ;;  %s2352_s30 = scalar_lea.hbm %s2563_s2, %s2231_s26 }
  0xa7   : > { %s431_s12 = scalar_lea.vmem [#allocation10], %s2228_s29  ;;  %s1916_s17 = scalar_lea.hbm %s2352_s30, 64 }
  0xa8   : > { %1666 = dma.hbm_to_vmem [thread:$0]  (!%p2630_p10), %s2326_s28, 64, %s403_s10, %s391_s22  }
  0xa9   : > { %s438_s16 = sshll.u32 %s431_s12, 4  ;;  %p1917_p13 = scmp.ne.s32.totalorder %s2352_s30, %s1916_s17  ;;  %s439_s16 = int_to_ptr.vmem [resolvable:$true] %s438_s16 }
  0xaa   : > { %s1921_s28 = scalar_lea.hbm %s2563_s2, 128  ;;  %p1922_p12 = scmp.lt.u32.totalorder %s2352_s30, %s2563_s2 }
  0xab   : > { %p1919_p6 = pnand %p1917_p13, %p2629_p11  ;;  %p1923_p0 = scmp.lt.u32.totalorder %s1921_s28, %s1916_s17 }
  0xac   : > { %p1925_p9 = scmp.lt.u32.totalorder %s1916_s17, %s2352_s30 }
  0xad   : > { %p1920_p8 = pneg %p1919_p6  ;;  %p1924_p5 = por %p1923_p0, %p1922_p12 }
  0xaf   : > { %p1926_p2 = por %p1925_p9, %p1924_p5 }
  0xb1   : > { %p1927_p4 = pnand %p1926_p2, %p1920_p8 }
  0xb3   : > { %1930 = shalt.err (!%p1927_p4)
}
  0xb4   : > { %s1931_s29 = scalar_lea.vmem %s439_s16, 64  ;;  %s2049_s26 = smov [#allocation10]  }
  0xb5   : > { %p1932_p7 = scmp.ne.s32.totalorder %s439_s16, %s1931_s29  ;;  %s1936_s15 = sshll.u32 %s2049_s26, 4  ;;  %s1937_s15 = int_to_ptr.vmem [resolvable:$false] %s1936_s15 }
  0xb6   : > { %s1938_s1 = scalar_lea.vmem %s1937_s15, 128  ;;  %p1939_p13 = scmp.lt.s32.totalorder %s439_s16, %s1937_s15 }
  0xb7   : > { %p1934_p3 = pnand %p1932_p7, %p2629_p11  ;;  %p1940_p6 = scmp.lt.s32.totalorder %s1938_s1, %s1931_s29 }
  0xb9   : > { %p1935_p1 = pneg %p1934_p3  ;;  %p1941_p10 = por %p1940_p6, %p1939_p13 }
  0xbb   : > { %p1942_p0 = pnand %p1941_p10, %p1935_p1 }
  0xbd   : > { %1945 = shalt.err (!%p1942_p0)
}
  0xbe   : > { %p2631_p12 = scmp.ne.s32.totalorder %s2621_s14, 0  ;;  %p2632_p8 = scmp.ne.s32.totalorder %s2612_s27, 0 }
  0xbf   : > { %s2376_s3 = sand.u32 (!%p2632_p8), 1, %s2024_s18   ;;  %p2633_p11 = scmp.ne.s32.totalorder (!%p2632_p8), %s2609_s25, 0 }
  0xc0   : > { %1672 = dma.hbm_to_vmem [thread:$0]  (!%p2631_p12), %s2352_s30, 64, %s439_s16, %s2252_s24  }
  0xc1   : > { %447 = sbr.rel (%p2632_p8) target bundleno = 1685 (0x695), region = 64  ;;  %s2379_s9 = sshll.u32 (!%p2632_p8), %s2376_s3, 2 }
  0xc2   : > { %s450_s21 = scalar_lea.sflag (!%p2632_p8), [#allocation6], %s2376_s3  ;;  %s453_s4 = scalar_lea.vmem (!%p2632_p8), [#allocation5], %s2379_s9 }
  0xc8   : > { %1999 = dma.done.wait (%p2633_p11), %s450_s21, 64  }
  0xc9   : > { %2001 = vsyncadd (%p2633_p11), %s450_s21, 4294967232  ;;  %s458_s27 = sand.u32 1, %s2150_s23   ;;  %s462_s24 = scalar_lea.vmem [#allocation8], %s2379_s9 }
  0xca   : > { %s459_s14 = scalar_lea.sflag [#allocation9], %s458_s27 }
  0xcb   : > { %2003 = dma.done.wait (%p2633_p11), %s459_s14, 128  }
  0xcc   : > { %2005 = vsyncadd (%p2633_p11), %s459_s14, 4294967168  ;;  %s471_s6 = scalar_lea.vmem [#allocation10], %s2379_s9  ;;  %p2634_p10 = scmp.eq.s32.totalorder %s2150_s23, 0 }
  0xce   : > { %2007 = dma.done.wait (%p2634_p10), [#allocation12], 512   ;;  %p2635_p5 = pmov %p2634_p10 }
  0xd0   : > { %2009 = vsyncadd (%p2635_p5), [#allocation12], 4294966784  ;;  %p2636_p9 = pmov %p2635_p5 }
  0xd1   : > { %p2637_p2 = pmov %p2635_p5 }
  0xd2   : > { %2011 = dma.done.wait (%p2636_p9), [#allocation15], 16  }
  0xd3   : > { %2013 = vsyncadd (%p2637_p2), [#allocation15], 4294967280  ;;  %v2050_v0 = vmov 0.0   ;;  %vm2051_vm0 = vmmov 0   ;;  %v1746_v1 = vld [vmem:[%s2566_s5] sm:$0xff]   ;;  %v1747_v2 = vld [vmem:[%s2566_s5 + $0x8] sm:$0xff]  }
  0xd4   : > { %1553 = vmatprep.subr.bf16.mxu0 %v2050_v0  ;;  %1557 = vmatprep.mubr.msk.bf16.mxu0 %vm2051_vm0, %v2050_v0  ;;  %v537_v3 = vld [vmem:[%s462_s24] sm:$0xf]  ;;  %vm561_vm1 = vcmask 261120   ;;  %v1748_v4 = vld [vmem:[#allocation11] sm:$0xff]   ;;  %v1749_v5 = vld [vmem:[#allocation11 + $0x8] sm:$0xff]   ;;  %s2638_s17 = sld [smem:[#allocation33_spill]] }
  0xd5   : > { %1561 = vmatprep.subr.bf16.mxu1 %v2050_v0  ;;  %1565 = vmatprep.mubr.msk.bf16.mxu1 %vm2051_vm0, %v2050_v0  ;;  %v677_v6 = vld [vmem:[%s453_s4] sm:$0xf]  ;;  %v1750_v7 = vld [vmem:[#allocation13] sm:$0xff]   ;;  %v1751_v8 = vld [vmem:[#allocation13 + $0x8] sm:$0xff]   ;;  %vm673_vm2 = vcmask 257024   ;;  %s2639_s28 = sld [smem:[#allocation32_spill]] }
  0xd6   : > { %1554 = vmatpush3.bf16.msra.mxu0 %v1746_v1  ;;  %1562 = vmatpush3.bf16.msra.mxu1 %v1750_v7  ;;  %v605_v9 = vld [vmem:[%s471_s6] sm:$0xf]  ;;  %vm748_vm3 = vcmask 64512   ;;  %s2052_s10 = smov 112   ;;  %s2053_s22 = smov 120   ;;  %vm813_vm4 = vcmask 1043456  }
  0xd7   : > { %1555 = vmatprep.subr.bf16.mxu0 %v2050_v0  ;;  %1563 = vmatprep.subr.bf16.mxu1 %v2050_v0  ;;  %s2054_s29 = smov 104   ;;  %v1493_v27 = vld [vmem:[#allocation14] ss:$0 sm:$0xff]  ;;  %vm858_vm5 = vcmask 60416   ;;  %s2055_s26 = smov 8   ;;  %vm987_vm6 = vcmask 126016  }
  0xd8   : > { %s2640_s9 = sld [smem:[#allocation34_spill]]  ;;  %s2056_s27 = smov 16   ;;  %vm1109_vm7 = vcmask 191616   ;;  %vm1231_vm8 = vcmask 257216  }
  0xd9   : > { %s2057_s14 = smov 24   ;;  %s2641_s24 = sld [smem:[#allocation23_spill]] }
  0xda   : > { %1556 = vmatpush3.bf16.msra.mxu0 %v1747_v2  ;;  %1564 = vmatpush3.bf16.msra.mxu1 %v1751_v8  ;;  %v1489_v10 = vld [vmem:[%s2638_s17] ss:$0 sm:$0xff]  ;;  %s1488_s6 = sshll.u32 %s2376_s3, 3  ;;  %s2642_s23 = sld [smem:[#allocation35_spill]] }
  0xdb   : > { %1569 = vmatprep.subr.bf16.mxu0 %v2050_v0  ;;  %1577 = vmatprep.subr.bf16.mxu1 %v2050_v0  ;;  %v1497_v17 = vld [vmem:[%s2639_s28] ss:$0 sm:$0xff]  ;;  %s2643_s30 = sld [smem:[#allocation28_spill]]  ;;  %s531_s16 = scalar_lea.vmem [#allocation16], %s1488_s6 }
  0xdc   : > { %s1316_s17 = sshll.u32 %s531_s16, 4  ;;  %s2644_s28 = sld [smem:[#allocation36_spill]]  ;;  %s2513_s17 = int_to_ptr.vmem [resolvable:$true] %s1316_s17 }
  0xdd   : > { %1558 = vmatmul.mubr.msk.bf16.vlgmr.msra.gmra.mrb[0].mxu0 %vm561_vm1, %v537_v3  ;;  %1566 = vmatmul.mubr.msk.bf16.vlgmr.msra.gmra.mrb[0].mxu1 %vm561_vm1, %v605_v9 }
  0xde   : > { %1570 = vmatpush3.bf16.msra.mxu0 %v1748_v4  ;;  %1573 = vmatprep.mubr.msk.bf16.mxu0 %vm2051_vm0, %v2050_v0 }
  0xdf   : > { %1571 = vmatprep.subr.bf16.mxu0 %v2050_v0  ;;  %1579 = vmatprep.mubr.msk.bf16.mxu1 %vm2051_vm0, %v2050_v0  ;;  %s1519_s12 = sshll.u32 %s2641_s24, 7 }
  0xe1   : > { %p2645_p7 = scmp.ne.s32.totalorder %s2643_s30, 0 }
  0xe2   : > { %1572 = vmatpush3.bf16.msra.mxu0 %v1749_v5 }
  0xe3   : > { %1583 = vmatprep.subr.bf16.mxu0 %v2050_v0 }
  0xe5   : > { %1574 = vmatmul.mubr.msk.bf16.vlgmr.msra.gmra.mrb[4].mxu0 %vm561_vm1, %v677_v6 }
  0xe6   : > { %1585 = vmatprep.mubr.msk.bf16.mxu0 %vm2051_vm0, %v2050_v0 }
 0x1b0   : > { %v599_v11 = vpop.f32.mrb[0].mxu0  ;;  %v666_v28 = vpop.f32.mrb[0].mxu1 }
 0x1b1   : > { %v600_v12 = vadd.f32 %v1489_v10, %v599_v11  ;;  %v1559_v13 = vpop.f32.mrb[1].mxu0  ;;  %v667_v29 = vadd.f32 %v1493_v27, %v666_v28  ;;  %v1567_v30 = vpop.f32.mrb[1].mxu1 }
 0x1b2   : > { %v602_v14 = vpop.f32.mrb[2].mxu0  ;;  %v669_v31 = vpop.f32.mrb[2].mxu1 }
 0x1b3   : > { %v672_v15 = vpack.c.bf16 %v600_v12, %v600_v12  ;;  %v1560_v16 = vpop.f32.mrb[3].mxu0  ;;  %v675_v32 = vpack.c.bf16 %v667_v29, %v667_v29  ;;  %v1568_v33 = vpop.f32.mrb[3].mxu1 }
 0x1b5   : > { %674 = vst.msk [vmem:[#allocation2] sm:$0xf] %vm673_vm2, %v672_v15  ;;  %676 = vst.msk [vmem:[#allocation3] sm:$0xf] %vm673_vm2, %v675_v32 }
 0x1b8   : > { %v739_v18 = vpop.f32.mrb[4].mxu0 }
 0x1b9   : > { %v1575_v19 = vpop.f32.mrb[5].mxu0  ;;  %v740_v21 = vadd.f32 %v1497_v17, %v739_v18 }
 0x1ba   : > { %v742_v20 = vpop.f32.mrb[6].mxu0 }
 0x1bb   : > { %v1576_v22 = vpop.f32.mrb[7].mxu0  ;;  %v745_v26 = vpack.c.bf16 %v740_v21, %v740_v21 }
 0x1bc   : > { %v746_v23 = vld [vmem:[#allocation2] sm:$0xf]  ;;  %v747_v34 = vld [vmem:[#allocation3] sm:$0xf] }
 0x1bd   : > { %v753_v24 = vsel %vm748_vm3, %v746_v23, 0  ;;  %v1503_v25 = vcombine.low %v746_v23, %v746_v23  ;;  %v815_v35 = vsel %vm813_vm4, %v747_v34, 0  ;;  %v1505_v9 = vcombine.low %v747_v34, %v747_v34 }
 0x1be   : > { %1578 = vmatpush3.bf16.xpose.msra.mxu1 %v753_v24  ;;  %1584 = vmatpush3.bf16.msra.mxu0 %v815_v35 }
 0x1bf   : > { %991 = vrot.lane.b32.xlu1 %v1503_v25, %s2052_s10  ;;  %866 = vrot.lane.b32.xlu0 %v1503_v25, %s2053_s22 }
 0x1c0   : > { %1589 = vmatprep.subr.bf16.mxu1 %v2050_v0  ;;  %1595 = vmatprep.subr.bf16.mxu0 %v2050_v0 }
 0x1c3   : > { %989 = vrot.lane.b32.xlu1 %v745_v26, %s2052_s10  ;;  %861 = vrot.lane.b32.xlu0 %v745_v26, %s2053_s22 }
 0x1c5   : > { %1580 = vmatmul.mubr.msk.bf16.vlgmr.msra.gmra.mrb[4].mxu1 %vm748_vm3, %v745_v26 }
 0x1c6   : > { %1591 = vmatprep.mubr.msk.bf16.mxu1 %vm2051_vm0, %v2050_v0 }
 0x1c7   : > { %1111 = vrot.lane.b32.xlu1 %v745_v26, %s2054_s29  ;;  %1113 = vrot.lane.b32.xlu0 %v1503_v25, %s2054_s29 }
 0x231   : > { %v867_v36 = vpop.permute.xlu0 %866  ;;  %v992_v38 = vpop.permute.xlu1 %991 }
 0x232   : > { %v872_v37 = vsel %vm748_vm3, %v867_v36, 0  ;;  %v997_v40 = vsel %vm748_vm3, %v992_v38, 0 }
 0x233   : > { %1590 = vmatpush3.bf16.xpose.msra.mxu1 %v872_v37 }
 0x234   : > { %1601 = vmatprep.subr.bf16.mxu1 %v2050_v0 }
 0x235   : > { %v862_v39 = vpop.permute.xlu0 %861  ;;  %v990_v42 = vpop.permute.xlu1 %989 }
 0x239   : > { %v1114_v41 = vpop.permute.xlu0 %1113  ;;  %v1112_v44 = vpop.permute.xlu1 %1111 }
 0x23a   : > { %1592 = vmatmul.mubr.msk.bf16.vlgmr.msra.gmra.mrb[8].mxu1 %vm748_vm3, %v862_v39  ;;  %v1119_v43 = vsel %vm748_vm3, %v1114_v41, 0 }
 0x23b   : > { %1602 = vmatpush3.bf16.xpose.msra.mxu1 %v997_v40  ;;  %1603 = vmatprep.mubr.msk.bf16.mxu1 %vm2051_vm0, %v2050_v0 }
 0x23c   : > { %1613 = vmatprep.subr.bf16.mxu1 %v2050_v0 }
 0x242   : > { %1604 = vmatmul.mubr.msk.bf16.vlgmr.msra.gmra.mrb[12].mxu1 %vm748_vm3, %v990_v42 }
 0x243   : > { %1614 = vmatpush3.bf16.xpose.msra.mxu1 %v1119_v43  ;;  %1615 = vmatprep.mubr.msk.bf16.mxu1 %vm2051_vm0, %v2050_v0 }
 0x244   : > { %1625 = vmatprep.subr.bf16.mxu1 %v2050_v0 }
 0x24a   : > { %1616 = vmatmul.mubr.msk.bf16.vlgmr.msra.gmra.mrb[16].mxu1 %vm748_vm3, %v1112_v44 }
 0x24b   : > { %1629 = vmatprep.mubr.msk.bf16.mxu1 %vm2051_vm0, %v2050_v0 }
 0x298   : > { %v789_v45 = vpop.f32.mrb[4].mxu1 }
 0x299   : > { %v1581_v46 = vpop.f32.mrb[5].mxu1  ;;  %v795_v47 = vsel %vm748_vm3, %v789_v45, -inf }
 0x29a   : > { %796 = vmax.xlane.f32.xlu0 %v795_v47  ;;  %v792_v48 = vpop.f32.mrb[6].mxu1 }
 0x29b   : > { %v1582_v49 = vpop.f32.mrb[7].mxu1 }
 0x30d   : > { %v908_v50 = vpop.f32.mrb[8].mxu1 }
 0x30e   : > { %v1593_v51 = vpop.f32.mrb[9].mxu1  ;;  %v914_v52 = vsel %vm748_vm3, %v908_v50, -inf }
 0x30f   : > { %915 = vmax.xlane.f32.xlu1 %v914_v52  ;;  %v911_v53 = vpop.f32.mrb[10].mxu1 }
 0x310   : > { %v1594_v54 = vpop.f32.mrb[11].mxu1 }
 0x315   : > { %v1033_v55 = vpop.f32.mrb[12].mxu1 }
 0x316   : > { %v1605_v56 = vpop.f32.mrb[13].mxu1  ;;  %v1039_v57 = vsel %vm748_vm3, %v1033_v55, -inf }
 0x317   : > { %1040 = vmax.xlane.f32.xlu0 %v1039_v57  ;;  %v1036_v58 = vpop.f32.mrb[14].mxu1 }
 0x318   : > { %v1606_v59 = vpop.f32.mrb[15].mxu1 }
 0x31d   : > { %v1155_v60 = vpop.f32.mrb[16].mxu1 }
 0x31e   : > { %v1617_v61 = vpop.f32.mrb[17].mxu1  ;;  %v1161_v62 = vsel %vm748_vm3, %v1155_v60, -inf }
 0x31f   : > { %1162 = vmax.xlane.f32.xlu0 %v1161_v62  ;;  %v1158_v63 = vpop.f32.mrb[18].mxu1 }
 0x320   : > { %v1618_v1 = vpop.f32.mrb[19].mxu1  ;;  %v1754_v63 = vld [vmem:[%s2640_s9] sm:$0xff]  }
 0x321   : > { %1626 = vmatpush3.bf16.msra.mxu1 %v1754_v63 }
 0x322   : > { %1627 = vmatprep.subr.bf16.mxu1 %v2050_v0 }
 0x327   : > { %v797_v2 = vpop.xlane.xlu0 %796 }
 0x328   : > { %v798_v3 = vsub.f32 %v789_v45, %v797_v2  ;;  %v1755_v2 = vld [vmem:[%s2640_s9 + $0x8] sm:$0xff]  }
 0x329   : > { %1628 = vmatpush3.bf16.msra.mxu1 %v1755_v2 }
 0x32a   : > { %v799_v4 = vpack.c.bf16 %v798_v3, %v798_v3 }
 0x32c   : > { %v801_v5 = vmul.bf16 1069105081, %v799_v4 }
 0x32e   : > { %1756 = vpow.bf16 %v801_v5 }
 0x339   : > { %v1757_v6 = vpop.eup %1756 }
 0x33a   : > { %v803_v7 = vunpack.c.l.bf16 %v1757_v6 }
 0x33c   : > { %v804_v8 = vsel %vm748_vm3, %v803_v7, 0.0 }
 0x33d   : > { %805 = vadd.xlane.f32.xlu1 %v804_v8 }
 0x34e   : > { %932 = vrot.lane.b32.xlu1 %v1505_v9, %s2053_s22  ;;  %s1302_s22 = scalar_lea.sflag [#allocation7], %s2376_s3 }
 0x39c   : > { %v916_v10 = vpop.xlane.xlu1 %915 }
 0x39d   : > { %v917_v11 = vsub.f32 %v908_v50, %v916_v10 }
 0x39f   : > { %v918_v12 = vpack.c.bf16 %v917_v11, %v917_v11 }
 0x3a1   : > { %v920_v13 = vmul.bf16 1069105081, %v918_v12 }
 0x3a3   : > { %1758 = vpow.bf16 %v920_v13 }
 0x3a4   : > { %v1041_v14 = vpop.xlane.xlu0 %1040 }
 0x3a5   : > { %v1042_v15 = vsub.f32 %v1033_v55, %v1041_v14 }
 0x3a7   : > { %v1043_v16 = vpack.c.bf16 %v1042_v15, %v1042_v15  ;;  %v1514_v15 = vld [vmem:[%s2642_s23] ss:$0 sm:$0xff] }
 0x3a9   : > { %v1045_v17 = vmul.bf16 1069105081, %v1043_v16 }
 0x3ab   : > { %1760 = vpow.bf16 %v1045_v17 }
 0x3ac   : > { %v1163_v18 = vpop.xlane.xlu0 %1162 }
 0x3ad   : > { %v1164_v19 = vsub.f32 %v1155_v60, %v1163_v18 }
 0x3ae   : > { %v1759_v20 = vpop.eup %1758 }
 0x3af   : > { %v1165_v21 = vpack.c.bf16 %v1164_v19, %v1164_v19  ;;  %v922_v22 = vunpack.c.l.bf16 %v1759_v20 }
 0x3b1   : > { %v1167_v23 = vmul.bf16 1069105081, %v1165_v21  ;;  %v923_v24 = vsel %vm748_vm3, %v922_v22, 0.0 }
 0x3b2   : > { %924 = vadd.xlane.f32.xlu0 %v923_v24 }
 0x3b3   : > { %1762 = vpow.bf16 %v1167_v23 }
 0x3b6   : > { %v1761_v25 = vpop.eup %1760 }
 0x3b7   : > { %v1047_v26 = vunpack.c.l.bf16 %v1761_v25 }
 0x3b9   : > { %v1048_v27 = vsel %vm748_vm3, %v1047_v26, 0.0 }
 0x3ba   : > { %1049 = vadd.xlane.f32.xlu1 %v1048_v27 }
 0x3be   : > { %v1763_v28 = vpop.eup %1762 }
 0x3bf   : > { %v1169_v29 = vunpack.c.l.bf16 %v1763_v28 }
 0x3c1   : > { %v1170_v30 = vsel %vm748_vm3, %v1169_v29, 0.0 }
 0x3c2   : > { %1171 = vadd.xlane.f32.xlu0 %v1170_v30 }
 0x3ca   : > { %v806_v31 = vpop.xlane.xlu1 %805 }
 0x3cb   : > { %1764 = vrcp.f32 %v806_v31  ;;  %1176 = vrot.lane.b32.xlu1 %v1505_v9, %s2054_s29  ;;  %s1946_s29 = scalar_lea.vmem %s2513_s17, 128 }
 0x3cc   : > { %p1947_p4 = scmp.ne.s32.totalorder %s2513_s17, %s1946_s29 }
 0x3ce   : > { %v933_v34 = vpop.permute.xlu1 %932  ;;  %p1948_p3 = pnand %p1947_p4, %p2645_p7 }
 0x3cf   : > { %v938_v36 = vsel %vm813_vm4, %v933_v34, 0 }
 0x3d0   : > { %p1949_p1 = pneg %p1948_p3 }
 0x3d5   : > { %v1765_v32 = vpop.eup %1764 }
 0x3d6   : > { %v808_v33 = vmul.f32 %v1765_v32, %v803_v7 }
 0x3d8   : > { %1054 = vrot.lane.b32.xlu0 %v1505_v9, %s2052_s10  ;;  %v809_v35 = vpack.c.bf16 %v808_v33, %v808_v33  ;;  %s2511_s10 = scalar_lea.hbm %s2644_s28, %s1519_s12 }
 0x3da   : > { %1586 = vmatmul.mubr.msk.bf16.vlgmr.msra.gmra.mrb[8].mxu0 %vm748_vm3, %v809_v35 }
 0x3db   : > { %1596 = vmatpush3.bf16.msra.mxu0 %v938_v36  ;;  %1597 = vmatprep.mubr.msk.bf16.mxu0 %vm2051_vm0, %v2050_v0 }
 0x3dc   : > { %1607 = vmatprep.subr.bf16.mxu0 %v2050_v0 }
 0x43f   : > { %v925_v37 = vpop.xlane.xlu0 %924 }
 0x440   : > { %1766 = vrcp.f32 %v925_v37 }
 0x447   : > { %v1050_v38 = vpop.xlane.xlu1 %1049 }
 0x448   : > { %1768 = vrcp.f32 %v1050_v38 }
 0x44a   : > { %v1767_v39 = vpop.eup %1766 }
 0x44b   : > { %v927_v40 = vmul.f32 %v1767_v39, %v922_v22  ;;  %v1177_v47 = vpop.permute.xlu1 %1176 }
 0x44c   : > { %v1182_v49 = vsel %vm813_vm4, %v1177_v47, 0 }
 0x44d   : > { %v928_v41 = vpack.c.bf16 %v927_v40, %v927_v40 }
 0x44f   : > { %1598 = vmatmul.mubr.msk.bf16.vlgmr.msra.gmra.mrb[12].mxu0 %vm748_vm3, %v928_v41  ;;  %v1172_v42 = vpop.xlane.xlu0 %1171 }
 0x450   : > { %1770 = vrcp.f32 %v1172_v42  ;;  %1609 = vmatprep.mubr.msk.bf16.mxu0 %vm2051_vm0, %v2050_v0 }
 0x452   : > { %v1769_v43 = vpop.eup %1768 }
 0x453   : > { %v1052_v44 = vmul.f32 %v1769_v43, %v1047_v26  ;;  %v1055_v45 = vpop.permute.xlu0 %1054 }
 0x454   : > { %v1060_v46 = vsel %vm813_vm4, %v1055_v45, 0 }
 0x455   : > { %1608 = vmatpush3.bf16.msra.mxu0 %v1060_v46  ;;  %v1053_v48 = vpack.c.bf16 %v1052_v44, %v1052_v44 }
 0x456   : > { %1619 = vmatprep.subr.bf16.mxu0 %v2050_v0 }
 0x458   : > { %1610 = vmatmul.mubr.msk.bf16.vlgmr.msra.gmra.mrb[16].mxu0 %vm748_vm3, %v1053_v48 }
 0x459   : > { %1620 = vmatpush3.bf16.msra.mxu0 %v1182_v49  ;;  %1621 = vmatprep.mubr.msk.bf16.mxu0 %vm2051_vm0, %v2050_v0 }
 0x45a   : > { %v1771_v50 = vpop.eup %1770 }
 0x45b   : > { %v1174_v51 = vmul.f32 %v1771_v50, %v1169_v29 }
 0x45d   : > { %v1175_v52 = vpack.c.bf16 %v1174_v51, %v1174_v51 }
 0x460   : > { %1622 = vmatmul.mubr.msk.bf16.vlgmr.msra.gmra.mrb[20].mxu0 %vm748_vm3, %v1175_v52 }
 0x4ad   : > { %v851_v53 = vpop.f32.mrb[8].mxu0 }
 0x4ae   : > { %v857_v54 = vpack.c.bf16 %v851_v53, %v851_v53  ;;  %v1587_v55 = vpop.f32.mrb[9].mxu0 }
 0x4af   : > { %v854_v56 = vpop.f32.mrb[10].mxu0 }
 0x4b0   : > { %859 = vst.msk [vmem:[#allocation4] sm:$0xf] %vm858_vm5, %v857_v54  ;;  %v1588_v57 = vpop.f32.mrb[11].mxu0 }
 0x522   : > { %v974_v58 = vpop.f32.mrb[12].mxu0 }
 0x523   : > { %v1522_v59 = vpack.c.bf16 %v974_v58, %v974_v58  ;;  %v1599_v60 = vpop.f32.mrb[13].mxu0 }
 0x524   : > { %v977_v61 = vpop.f32.mrb[14].mxu0 }
 0x525   : > { %984 = vrot.lane.b32.xlu1 %v1522_v59, %s2055_s26  ;;  %v1600_v62 = vpop.f32.mrb[15].mxu0  ;;  %s2058_s26 = smov [#allocation16]  }
 0x526   : > { %s1950_s15 = sshll.u32 %s2058_s26, 4  ;;  %s1951_s15 = int_to_ptr.vmem [resolvable:$false] %s1950_s15 }
 0x527   : > { %s1952_s1 = scalar_lea.vmem %s1951_s15, 256  ;;  %p1953_p13 = scmp.lt.s32.totalorder %s2513_s17, %s1951_s15 }
 0x528   : > { %p1954_p6 = scmp.lt.s32.totalorder %s1952_s1, %s1946_s29 }
 0x52a   : > { %p1955_p0 = por %p1954_p6, %p1953_p13 }
 0x52b   : > { %v1096_v1 = vpop.f32.mrb[16].mxu0 }
 0x52c   : > { %v1523_v3 = vpack.c.bf16 %v1096_v1, %v1096_v1  ;;  %v1611_v4 = vpop.f32.mrb[17].mxu0  ;;  %p1956_p12 = pnand %p1955_p0, %p1949_p1 }
 0x52d   : > { %v1099_v5 = vpop.f32.mrb[18].mxu0 }
 0x52e   : > { %1106 = vrot.lane.b32.xlu0 %v1523_v3, %s2056_s27  ;;  %v1612_v6 = vpop.f32.mrb[19].mxu0 }
 0x533   : > { %v1218_v7 = vpop.f32.mrb[20].mxu0 }
 0x534   : > { %v1524_v8 = vpack.c.bf16 %v1218_v7, %v1218_v7  ;;  %v1623_v9 = vpop.f32.mrb[21].mxu0 }
 0x535   : > { %v1221_v10 = vpop.f32.mrb[22].mxu0 }
 0x536   : > { %1228 = vrot.lane.b32.xlu1 %v1524_v8, %s2057_s14  ;;  %v1624_v11 = vpop.f32.mrb[23].mxu0 }
 0x597   : > { %v985_v12 = vpop.permute.xlu1 %984 }
 0x598   : > { %988 = vst.msk [vmem:[#allocation4] sm:$0xf] %vm987_vm6, %v985_v12 }
 0x5a0   : > { %v1107_v13 = vpop.permute.xlu0 %1106 }
 0x5a1   : > { %1110 = vst.msk [vmem:[#allocation4] sm:$0xf] %vm1109_vm7, %v1107_v13 }
 0x5a8   : > { %v1229_v0 = vpop.permute.xlu1 %1228 }
 0x5a9   : > { %1232 = vst.msk [vmem:[#allocation4] sm:$0xf] %vm1231_vm8, %v1229_v0 }
 0x5b0   : > { %v1233_v14 = vld [vmem:[#allocation4] sm:$0xf] }
 0x5b1   : > { %1630 = vmatmul.mubr.msk.bf16.vlgmr.msra.gmra.mrb[20].mxu1 %vm561_vm1, %v1233_v14 }
 0x684   : > { %v1294_v16 = vpop.f32.mrb[20].mxu1 }
 0x685   : > { %v1295_v17 = vadd.f32 %v1514_v15, %v1294_v16  ;;  %v1631_v18 = vpop.f32.mrb[21].mxu1 }
 0x686   : > { %v1297_v19 = vpop.f32.mrb[22].mxu1 }
 0x687   : > { %v1632_v20 = vpop.f32.mrb[23].mxu1  ;;  %1300 = vst.msk [vmem:[%s531_s16] sm:$0xff] %vm561_vm1, %v1295_v17 }
 0x688   : > { %1959 = shalt.err (!%p1956_p12)
}
 0x689   : > { %s1960_s3 = scalar_lea.hbm %s2511_s10, 128  ;;  %s1964_s27 = scalar_lea.hbm %s2644_s28, 256 }
 0x68a   : > { %p1961_p8 = scmp.ne.s32.totalorder %s2511_s10, %s1960_s3  ;;  %p1965_p5 = scmp.lt.u32.totalorder %s2511_s10, %s2644_s28 }
 0x68b   : > { %p1966_p9 = scmp.lt.u32.totalorder %s1964_s27, %s1960_s3  ;;  %p1968_p4 = scmp.lt.u32.totalorder %s1960_s3, %s2511_s10 }
 0x68c   : > { %p1962_p11 = pnand %p1961_p8, %p2645_p7 }
 0x68d   : > { %p1967_p2 = por %p1966_p9, %p1965_p5 }
 0x68e   : > { %p1963_p10 = pneg %p1962_p11 }
 0x68f   : > { %p1969_p3 = por %p1968_p4, %p1967_p2 }
 0x691   : > { %p1970_p1 = pnand %p1969_p3, %p1963_p10 }
 0x693   : > { %1973 = shalt.err (!%p1970_p1)
}
 0x694   : > { %1651 = dma.vmem_to_hbm [thread:$0]  (%p2645_p7), %s2513_s17, 128, %s2511_s10, %s1302_s22  }
 0x695 PF: > { %s2646_s6 = sld [smem:[#allocation22_spill]]  ;;  %s2647_s25 = sld [smem:[#allocation26_spill]] }
 0x696   : > { %s2648_s13 = sld [smem:[#allocation25_spill]] }
 0x69b   : > { %s1328_s23 = sand.u32 1, %s2646_s6   ;;  %p2649_p13 = scmp.ne.s32.totalorder %s2647_s25, 0 }
 0x69c   : > { %p2650_p6 = scmp.ge.s32.totalorder %s2648_s13, 2  ;;  %s1329_s12 = scalar_lea.sflag [#allocation7], %s1328_s23 }
 0x69e   : > { %p1674_p0 = pnand %p2650_p6, %p2649_p13 }
 0x6a0   : > { %2015 = dma.done.wait (!%p1674_p0), %s1329_s12, 128  }
 0x6a1   : > { %2017 = vsyncadd (!%p1674_p0), %s1329_s12, 4294967168  ;;  %s32_s22 = sadd.s32 1, %s2648_s13   ;;  %s2651_s30 = sld [smem:[#allocation29_spill]] }
 0x6a2   : > { %p29_p12 = scmp.ge.s32.totalorder %s32_s22, 4   ;;  %s2652_s20 = sld [smem:[#allocation24_spill]] }
 0x6a3   : > { %s2653_s21 = sld [smem:[#allocation27_spill]]  ;;  %s2654_s17 = smov %s2024_s18 }
 0x6a4   : > { %s2655_s18 = smov %s2028_s19  ;;  %31 = sbr.rel (!%p29_p12) target bundleno = 18 (0x12), region = 149 }
 0x6a7   : > { %s2656_s19 = smov %s2651_s30 }
 0x6ab   :  { %1334 = vsyncpa [#allocation6], 1 }
 0x6ac   :  { %1336 = vsyncpa [#allocation6 + $0x1], 1 }
 0x6ad   :  { %1337 = vsyncpa [#allocation9], 1 }
 0x6ae   :  { %1339 = vsyncpa [#allocation9 + $0x1], 1 }
 0x6af   :  { %1340 = vsyncpa [#allocation12], 1 }
 0x6b0   :  { %1341 = vsyncpa [#allocation15], 1 }
 0x6b1   :  { %1342 = vsyncpa [#allocation7], 1 }
 0x6b2   :  { %1344 = vsyncpa [#allocation7 + $0x1], 1 }

</bundles_post_ra>
